<compile_context>
chip_gen: v7x
topology: tpu7x:2x2x1
jax: 0.10.0
libtpu: 0.0.40
codegen_flags: <defaults>
</compile_context>

<pallas_src>
import jax
import jax.numpy as jnp
from jax.experimental import pallas as pl
from jax.experimental.pallas import tpu as pltpu


def _round_up(n, m):
    return ((n + m - 1) // m) * m


def mlp_kernel(x_ref, w1_ref, b1_ref, w2_ref, b2_ref, out_ref):
    # ---- fused Linear -> ReLU -> (Dropout=identity) -> Linear on the MXU/VPU ----
    x = x_ref[...]                                                   # (tb, in)
    h = jnp.dot(x, w1_ref[...], preferred_element_type=jnp.float32)  # f32 accum
    h = jnp.maximum(h + b1_ref[...], 0.0)                            # bias + ReLU (f32 VPU)
    # Dropout: identity in eval mode (see module-level note)
    h = h.astype(w2_ref.dtype)                                       # back to MXU input dtype
    o = jnp.dot(h, w2_ref[...], preferred_element_type=jnp.float32)  # f32 accum
    out_ref[...] = (o + b2_ref[...]).astype(out_ref.dtype)


def mlp_for_dialog(x, w1, b1, w2, b2, *, tile_b=None, compute_dtype=jnp.bfloat16):
    """Fused MLP (Linear -> ReLU -> Dropout(eval) -> Linear) as a Pallas TPU kernel.

    x : (B, input_size)
    w1: (input_size, hidden),  b1: (1, hidden) or (hidden,)
    w2: (hidden, out_size),    b2: (1, out_size) or (out_size,)
    Returns (out, log) matching the PyTorch module: out is (B, out_size), log = {}.
    """
    B, in_size = x.shape
    hidden = w1.shape[1]
    out_size = w2.shape[1]
    b1 = jnp.asarray(b1).reshape(1, -1)
    b2 = jnp.asarray(b2).reshape(1, -1)

    cd = jnp.dtype(compute_dtype)

    # ---- lane-dense padding: hidden & out up to multiples of 128 (MXU N dims) ----
    hidden_p = _round_up(hidden, 128)
    out_p = _round_up(out_size, 128)

    x_c = x.astype(cd)
    w1_p = jnp.zeros((in_size, hidden_p), cd).at[:, :hidden].set(w1.astype(cd))
    b1_p = jnp.zeros((1, hidden_p), jnp.float32).at[:, :hidden].set(b1.astype(jnp.float32))
    w2_p = jnp.zeros((hidden_p, out_p), cd).at[:hidden, :out_size].set(w2.astype(cd))
    b2_p = jnp.zeros((1, out_p), jnp.float32).at[:, :out_size].set(b2.astype(jnp.float32))

    # ---- batch tile selection: sublane-aligned, VMEM-budgeted, ~256 rows target ----
    sub = max(8, 32 // cd.itemsize)          # 8 for f32, 16 for bf16 (sublane packing)
    if tile_b is None:
        tile_b = 256
        per_row = (2 * in_size * cd.itemsize          # x tile (double-buffered)
                   + 2 * out_p * 4                    # out tile (double-buffered, f32)
                   + hidden_p * (4 + cd.itemsize))    # intermediate h (f32 + cast copy)
        while tile_b > sub and tile_b * per_row > (16 << 20):
            tile_b //= 2
    tile_b = max(sub, _round_up(min(tile_b, B), sub))
    B_p = _round_up(B, tile_b)
    if B_p != B:
        x_c = jnp.zeros((B_p, in_size), cd).at[:B, :].set(x_c)

    grid = (B_p // tile_b,)

    # ---- explicit VMEM limit from the actual per-step footprint ----
    vmem_bytes = (
        2 * tile_b * in_size * cd.itemsize                             # x (double-buffered)
        + 2 * tile_b * out_p * 4                                       # out (double-buffered)
        + 2 * (in_size * hidden_p + hidden_p * out_p) * cd.itemsize    # weights
        + 2 * (hidden_p + out_p) * 4                                   # biases
        + tile_b * hidden_p * (4 + cd.itemsize)                        # intermediate h
    )
    vmem_limit = int(min(max(2 * vmem_bytes, 32 << 20), 56 << 20))     # stay < v7x 64 MiB

    cost = pl.CostEstimate(
        flops=2 * B_p * in_size * hidden_p + 2 * B_p * hidden_p * out_p,
        transcendentals=0,
        bytes_accessed=(x_c.size * cd.itemsize
                        + w1_p.size * cd.itemsize + w2_p.size * cd.itemsize
                        + b1_p.size * 4 + b2_p.size * 4
                        + B_p * out_p * 4),
    )

    out_full = pl.pallas_call(
        mlp_kernel,
        out_shape=jax.ShapeDtypeStruct((B_p, out_p), jnp.float32),
        grid_spec=pltpu.PrefetchScalarGridSpec(
            num_scalar_prefetch=0,
            grid=grid,
            in_specs=[
                # batch tile of x; weights/biases are resident (constant block index)
                pl.BlockSpec((tile_b, in_size), lambda i: (i, 0)),
                pl.BlockSpec((in_size, hidden_p), lambda i: (0, 0)),
                pl.BlockSpec((1, hidden_p), lambda i: (0, 0)),
                pl.BlockSpec((hidden_p, out_p), lambda i: (0, 0)),
                pl.BlockSpec((1, out_p), lambda i: (0, 0)),
            ],
            out_specs=pl.BlockSpec((tile_b, out_p), lambda i: (i, 0)),
        ),
        compiler_params=pltpu.CompilerParams(
            dimension_semantics=("parallel",),   # batch axis is independent -> megacore-shardable
            vmem_limit_bytes=vmem_limit,
        ),
        cost_estimate=cost,
    )(x_c, w1_p, b1_p, w2_p, b2_p)

    out = out_full[:B, :out_size].astype(x.dtype)
    log = {}
    return out, log


def _init_linear(key, fan_in, fan_out):
    """Deterministic init mimicking torch.nn.Linear default (uniform +/- 1/sqrt(fan_in)).
    Weight is returned already transposed to (fan_in, fan_out)."""
    kw, kb = jax.random.split(key)
    bound = 1.0 / jnp.sqrt(jnp.float32(fan_in))
    w = jax.random.uniform(kw, (fan_in, fan_out), jnp.float32, -bound, bound)
    b = jax.random.uniform(kb, (1, fan_out), jnp.float32, -bound, bound)
    return w, b


if __name__ == "__main__":
    # Small shapes consistent with the module: x is (batch, input_size)
    batch, input_size, hidden_size, out_size = 8, 32, 64, 16

    key = jax.random.PRNGKey(0)
    kx, k1, k2 = jax.random.split(key, 3)

    x = jax.random.normal(kx, (batch, input_size), jnp.float32)
    w1, b1 = _init_linear(k1, input_size, hidden_size)
    w2, b2 = _init_linear(k2, hidden_size, out_size)

    # Default (performance) path: bf16 MXU inputs, f32 accumulation.
    out, log = mlp_for_dialog(x, w1, b1, w2, b2)
    out = jax.block_until_ready(out)

    ref = jnp.maximum(x @ w1 + b1, 0.0) @ w2 + b2
    assert out.shape == (batch, out_size)
    assert log == {}
    assert jnp.allclose(out, ref, atol=3e-2, rtol=3e-2)      # bf16 tolerance

    # Exactness check with f32 MXU inputs (same kernel, compute_dtype=f32).
    out32, _ = mlp_for_dialog(x, w1, b1, w2, b2, compute_dtype=jnp.float32)
    out32 = jax.block_until_ready(out32)
    assert jnp.allclose(out32, ref, atol=1e-5, rtol=1e-5)

    print("KERNEL_OK")
</pallas_src>

<mosaic_0001>
module attributes {stable_mosaic.version = 11 : i64} {
  func.func @mlp_kernel(%arg0: i32, %arg1: memref<16x32xbf16, #tpu.memory_space<vmem>>, %arg2: memref<32x128xbf16, #tpu.memory_space<vmem>>, %arg3: memref<1x128xf32, #tpu.memory_space<vmem>>, %arg4: memref<128x128xbf16, #tpu.memory_space<vmem>>, %arg5: memref<1x128xf32, #tpu.memory_space<vmem>>, %arg6: memref<16x128xf32, #tpu.memory_space<vmem>>) attributes {dimension_semantics = [#tpu.dimension_semantics<parallel>], iteration_bounds = array<i64: 1>, scalar_prefetch = 0 : i64, scratch_operands = 0 : i64, tpu.core_type = #tpu.core_type<tc>, window_params = [{transform_indices = @transform_0, window_bounds = array<i64: 16, 32>}, {pipeline_mode = #tpu.pipeline_mode<synchronous>, transform_indices = @transform_1, window_bounds = array<i64: 32, 128>}, {pipeline_mode = #tpu.pipeline_mode<synchronous>, transform_indices = @transform_2, window_bounds = array<i64: 1, 128>}, {pipeline_mode = #tpu.pipeline_mode<synchronous>, transform_indices = @transform_3, window_bounds = array<i64: 128, 128>}, {pipeline_mode = #tpu.pipeline_mode<synchronous>, transform_indices = @transform_4, window_bounds = array<i64: 1, 128>}, {transform_indices = @transform_5, window_bounds = array<i64: 16, 128>}]} {
    %c0 = arith.constant 0 : index
    %c0_0 = arith.constant 0 : index
    %0 = vector.load %arg1[%c0, %c0_0] : memref<16x32xbf16, #tpu.memory_space<vmem>>, vector<16x32xbf16>
    %c0_1 = arith.constant 0 : index
    %c0_2 = arith.constant 0 : index
    %1 = vector.load %arg2[%c0_1, %c0_2] : memref<32x128xbf16, #tpu.memory_space<vmem>>, vector<32x128xbf16>
    %cst = arith.constant dense<0.000000e+00> : vector<16x128xf32>
    %2 = tpu.matmul %0, %1, %cst {dimension_numbers = #tpu.dot_dimension_numbers<[1], [0], [0], [1], [0, 0, 1, 1], [], []>} : vector<16x32xbf16>, vector<32x128xbf16>, vector<16x128xf32> -> vector<16x128xf32>
    %c0_3 = arith.constant 0 : index
    %c0_4 = arith.constant 0 : index
    %3 = vector.load %arg3[%c0_3, %c0_4] : memref<1x128xf32, #tpu.memory_space<vmem>>, vector<1x128xf32>
    %4 = vector.broadcast %3 : vector<1x128xf32> to vector<16x128xf32>
    %5 = arith.addf %2, %4 : vector<16x128xf32>
    %cst_5 = arith.constant 0.000000e+00 : f32
    %6 = vector.broadcast %cst_5 : f32 to vector<16x128xf32>
    %7 = arith.maximumf %5, %6 : vector<16x128xf32>
    %8 = arith.truncf %7 : vector<16x128xf32> to vector<16x128xbf16>
    %c0_6 = arith.constant 0 : index
    %c0_7 = arith.constant 0 : index
    %9 = vector.load %arg4[%c0_6, %c0_7] : memref<128x128xbf16, #tpu.memory_space<vmem>>, vector<128x128xbf16>
    %cst_8 = arith.constant dense<0.000000e+00> : vector<16x128xf32>
    %10 = tpu.matmul %8, %9, %cst_8 {dimension_numbers = #tpu.dot_dimension_numbers<[1], [0], [0], [1], [0, 0, 1, 1], [], []>} : vector<16x128xbf16>, vector<128x128xbf16>, vector<16x128xf32> -> vector<16x128xf32>
    %c0_9 = arith.constant 0 : index
    %c0_10 = arith.constant 0 : index
    %11 = vector.load %arg5[%c0_9, %c0_10] : memref<1x128xf32, #tpu.memory_space<vmem>>, vector<1x128xf32>
    %12 = vector.broadcast %11 : vector<1x128xf32> to vector<16x128xf32>
    %13 = arith.addf %10, %12 : vector<16x128xf32>
    %c0_11 = arith.constant 0 : index
    %c0_12 = arith.constant 0 : index
    %14 = vector.load %arg6[%c0_11, %c0_12] : memref<16x128xf32, #tpu.memory_space<vmem>>, vector<16x128xf32>
    tpu.vector_store %arg6[%c0_11, %c0_12], %13 {strides = array<i32>} : memref<16x128xf32, #tpu.memory_space<vmem>>, vector<16x128xf32>,
    return
  }
  func.func @transform_0(%arg0: i32) -> (i32, i32) {
    %c0_i32 = arith.constant 0 : i32
    %c0_i32_0 = arith.constant 0 : i32
    return %arg0, %c0_i32 : i32, i32
  }
  func.func @transform_1(%arg0: i32) -> (i32, i32) {
    %c0_i32 = arith.constant 0 : i32
    %c0_i32_0 = arith.constant 0 : i32
    %c0_i32_1 = arith.constant 0 : i32
    return %c0_i32, %c0_i32_0 : i32, i32
  }
  func.func @transform_2(%arg0: i32) -> (i32, i32) {
    %c0_i32 = arith.constant 0 : i32
    %c0_i32_0 = arith.constant 0 : i32
    %c0_i32_1 = arith.constant 0 : i32
    return %c0_i32, %c0_i32_0 : i32, i32
  }
  func.func @transform_3(%arg0: i32) -> (i32, i32) {
    %c0_i32 = arith.constant 0 : i32
    %c0_i32_0 = arith.constant 0 : i32
    %c0_i32_1 = arith.constant 0 : i32
    return %c0_i32, %c0_i32_0 : i32, i32
  }
  func.func @transform_4(%arg0: i32) -> (i32, i32) {
    %c0_i32 = arith.constant 0 : i32
    %c0_i32_0 = arith.constant 0 : i32
    %c0_i32_1 = arith.constant 0 : i32
    return %c0_i32, %c0_i32_0 : i32, i32
  }
  func.func @transform_5(%arg0: i32) -> (i32, i32) {
    %c0_i32 = arith.constant 0 : i32
    %c0_i32_0 = arith.constant 0 : i32
    return %arg0, %c0_i32 : i32, i32
  }
}

</mosaic_0001>

<bundles_post_ra>
// kernel: tpu_custom_call.1
= control target key start
LH: loop header
LB: loop body
LE: loop exit
PB: predicated region body
PF: predicated region fallthrough
CT: control target
= control target key end

     0   :  { %10 = vsyncpa [#allocation3], 0  ;;  %s552_s0 = inlined_call_operand.hbm [shape: bf16[16,32], index: 0, kind: input, shape index: {}]   ;;  %s553_s1 = inlined_call_operand.hbm [shape: bf16[32,128], index: 1, kind: input, shape index: {}]   ;;  %s554_s2 = inlined_call_operand.vmem [shape: f32[1,128], index: 2, kind: input, shape index: {}]   ;;  %s555_s3 = inlined_call_operand.hbm [shape: bf16[128,128], index: 3, kind: input, shape index: {}]   ;;  %s556_s4 = inlined_call_operand.vmem [shape: f32[1,128], index: 4, kind: input, shape index: {}]   ;;  %s557_s5 = inlined_call_operand.hbm [shape: f32[16,128], index: 5, kind: output, shape index: {}]  }
   0x1   :  { %11 = vsyncpa [#allocation6], 0 }
   0x2   :  { %12 = vsyncpa [#allocation4], 0  ;;  %s442_s18 = smov [#allocation5]   ;;  %s443_s20 = smov [#allocation2]  }
   0x3   :  { %s30_s19 = sshll.u32 %s442_s18, 4  ;;  %s18_s21 = sshll.u32 %s443_s20, 4  ;;  %s31_s19 = int_to_ptr.vmem [resolvable:$true] %s30_s19  ;;  %s482_s21 = int_to_ptr.vmem [resolvable:$true] %s18_s21 }
   0x4   :  { %s348_s24 = scalar_lea.hbm %s553_s1, 256 }
   0x5   :  { %p349_p0 = scmp.ne.s32.totalorder %s553_s1, %s348_s24  ;;  %p352_p1 = scmp.lt.u32.totalorder %s348_s24, %s553_s1 }
   0x7   :  { %p354_p2 = pnand %p352_p1, %p349_p0 }
   0x9   :  { %357 = shalt.err (!%p354_p2)
}
   0xa   :  { %s358_s29 = scalar_lea.vmem %s31_s19, 256  ;;  %p363_p4 = scmp.lt.s32.totalorder %s31_s19, %s31_s19 }
   0xb   :  { %p359_p3 = scmp.ne.s32.totalorder %s31_s19, %s358_s29  ;;  %p364_p5 = scmp.lt.s32.totalorder %s358_s29, %s358_s29 }
   0xd   :  { %p365_p6 = por %p364_p5, %p363_p4 }
   0xf   :  { %p366_p7 = pnand %p365_p6, %p359_p3 }
  0x11   :  { %369 = shalt.err (!%p366_p7)
}
  0x12   :  { %s444_s30 = smov 64   ;;  %s445_s6 = smov 4  }
  0x13   :  { %36 = dma.hbm_to_vmem [thread:$0]  %s553_s1, 256, %s31_s19, [#allocation6], %s444_s30, %s444_s30, %s445_s6  }
  0x14   :  { %s370_s11 = scalar_lea.hbm %s552_s0, 128 }
  0x15   :  { %p371_p8 = scmp.ne.s32.totalorder %s552_s0, %s370_s11  ;;  %p374_p9 = scmp.lt.u32.totalorder %s370_s11, %s552_s0 }
  0x17   :  { %p376_p10 = pnand %p374_p9, %p371_p8 }
  0x19   :  { %379 = shalt.err (!%p376_p10)
}
  0x1a   :  { %s380_s16 = scalar_lea.vmem %s482_s21, 128  ;;  %p385_p12 = scmp.lt.s32.totalorder %s482_s21, %s482_s21 }
  0x1b   :  { %p381_p11 = scmp.ne.s32.totalorder %s482_s21, %s380_s16  ;;  %p386_p13 = scmp.lt.s32.totalorder %s380_s16, %s380_s16 }
  0x1d   :  { %p387_p0 = por %p386_p13, %p385_p12 }
  0x1f   :  { %p388_p1 = pnand %p387_p0, %p381_p11 }
  0x21   :  { %391 = shalt.err (!%p388_p1)
}
  0x22   :  { %24 = dma.hbm_to_vmem [thread:$0]  %s552_s0, 128, %s482_s21, [#allocation3], %s444_s30, %s444_s30, %s445_s6  }
  0x23   :  { %s446_s18 = smov [#allocation7]   ;;  %s392_s23 = scalar_lea.hbm %s555_s3, 1024 }
  0x24   :  { %s44_s19 = sshll.u32 %s446_s18, 4  ;;  %p393_p2 = scmp.ne.s32.totalorder %s555_s3, %s392_s23  ;;  %s45_s19 = int_to_ptr.vmem [resolvable:$true] %s44_s19 }
  0x25   :  { %p396_p3 = scmp.lt.u32.totalorder %s392_s23, %s555_s3 }
  0x27   :  { %p398_p4 = pnand %p396_p3, %p393_p2 }
  0x29   :  { %401 = shalt.err (!%p398_p4)
}
  0x2a   :  { %s402_s28 = scalar_lea.vmem %s45_s19, 1024  ;;  %p407_p6 = scmp.lt.s32.totalorder %s45_s19, %s45_s19 }
  0x2b   :  { %p403_p5 = scmp.ne.s32.totalorder %s45_s19, %s402_s28  ;;  %p408_p7 = scmp.lt.s32.totalorder %s402_s28, %s402_s28 }
  0x2d   :  { %p409_p8 = por %p408_p7, %p407_p6 }
  0x2f   :  { %p410_p9 = pnand %p409_p8, %p403_p5 }
  0x31   :  { %413 = shalt.err (!%p410_p9)
}
  0x32   :  { %50 = dma.hbm_to_vmem [thread:$0]  %s555_s3, 1024, %s45_s19, [#allocation6], %s444_s30, %s444_s30, %s445_s6  }
  0x33   :  { %436 = dma.done.wait [#allocation3], 128  }
  0x34   :  { %437 = vsyncadd [#allocation3], 4294967168 }
  0x35   :  { %438 = dma.done.wait [#allocation6], 1280  }
  0x36   :  { %439 = vsyncadd [#allocation6], 4294966016  ;;  %v447_v0 = vmov 0.0   ;;  %vm448_vm0 = vmmov 0   ;;  %v337_v1 = vld [vmem:[#allocation5] sm:$0xff]   ;;  %v338_v2 = vld [vmem:[#allocation5 + $0x8] sm:$0xff]  }
  0x37   :  { %299 = vmatprep.subr.bf16.mxu0 %v447_v0  ;;  %303 = vmatprep.mubr.msk.bf16.mxu0 %vm448_vm0, %v447_v0  ;;  %v340_v3 = vld [vmem:[#allocation7] sm:$0xff]   ;;  %v339_v4 = vld [vmem:[#allocation2] sm:$0xff]   ;;  %vm93_vm1 = vcmask 261120   ;;  %v342_v6 = vld [vmem:[#allocation7 + $0x10] sm:$0xff]   ;;  %s449_s7 = smov [#allocation8]  }
  0x38   :  { %307 = vmatprep.subr.bf16.mxu1 %v447_v0  ;;  %323 = vmatprep.mubr.msk.bf16.mxu1 %vm448_vm0, %v447_v0  ;;  %v341_v5 = vld [vmem:[#allocation7 + $0x8] sm:$0xff]   ;;  %v343_v7 = vld [vmem:[#allocation7 + $0x18] sm:$0xff]   ;;  %v344_v8 = vld [vmem:[#allocation7 + $0x20] sm:$0xff]   ;;  %s260_s8 = sshll.u32 %s449_s7, 4  ;;  %s261_s8 = int_to_ptr.vmem [resolvable:$true] %s260_s8 }
  0x39   :  { %300 = vmatpush3.bf16.msra.mxu0 %v337_v1  ;;  %308 = vmatpush3.bf16.msra.mxu1 %v340_v3  ;;  %v345_v9 = vld [vmem:[#allocation7 + $0x28] sm:$0xff]   ;;  %v346_v10 = vld [vmem:[#allocation7 + $0x30] sm:$0xff]   ;;  %v347_v11 = vld [vmem:[#allocation7 + $0x38] sm:$0xff]   ;;  %p419_p11 = scmp.lt.s32.totalorder %s261_s8, %s261_s8 }
  0x3a   :  { %301 = vmatprep.subr.bf16.mxu0 %v447_v0  ;;  %309 = vmatprep.subr.bf16.mxu1 %v447_v0  ;;  %v273_v12 = vld [vmem:[%s554_s2] ss:$0 sm:$0xff]  ;;  %s414_s2 = scalar_lea.vmem %s261_s8, 256 }
  0x3b   :  { %v278_v22 = vld [vmem:[%s556_s4] ss:$0 sm:$0xff]  ;;  %p415_p10 = scmp.ne.s32.totalorder %s261_s8, %s414_s2  ;;  %p420_p12 = scmp.lt.s32.totalorder %s414_s2, %s414_s2 }
  0x3d   :  { %302 = vmatpush3.bf16.msra.mxu0 %v338_v2  ;;  %310 = vmatpush3.bf16.msra.mxu1 %v341_v5  ;;  %p421_p13 = por %p420_p12, %p419_p11 }
  0x3e   :  { %311 = vmatprep.subr.bf16.mxu1 %v447_v0 }
  0x3f   :  { %p422_p0 = pnand %p421_p13, %p415_p10 }
  0x40   :  { %304 = vmatmul.mubr.msk.bf16.vlgmr.msra.gmra.mrb[0].mxu0 %vm93_vm1, %v339_v4 }
  0x41   :  { %312 = vmatpush3.bf16.msra.mxu1 %v342_v6 }
  0x42   :  { %313 = vmatprep.subr.bf16.mxu1 %v447_v0 }
  0x45   :  { %314 = vmatpush3.bf16.msra.mxu1 %v343_v7 }
  0x46   :  { %315 = vmatprep.subr.bf16.mxu1 %v447_v0 }
  0x49   :  { %316 = vmatpush3.bf16.msra.mxu1 %v344_v8 }
  0x4a   :  { %317 = vmatprep.subr.bf16.mxu1 %v447_v0 }
  0x4d   :  { %318 = vmatpush3.bf16.msra.mxu1 %v345_v9 }
  0x4e   :  { %319 = vmatprep.subr.bf16.mxu1 %v447_v0 }
  0x51   :  { %320 = vmatpush3.bf16.msra.mxu1 %v346_v10 }
  0x52   :  { %321 = vmatprep.subr.bf16.mxu1 %v447_v0 }
  0x55   :  { %322 = vmatpush3.bf16.msra.mxu1 %v347_v11 }
 0x113   :  { %v131_v13 = vpop.f32.mrb[0].mxu0 }
 0x114   :  { %v132_v14 = vadd.f32 %v273_v12, %v131_v13  ;;  %v305_v15 = vpop.f32.mrb[1].mxu0 }
 0x115   :  { %v134_v16 = vpop.f32.mrb[2].mxu0 }
 0x116   :  { %v135_v17 = vadd.f32 %v273_v12, %v134_v16  ;;  %v306_v18 = vpop.f32.mrb[3].mxu0  ;;  %v138_v19 = vmax.f32 %v132_v14, 0.0 }
 0x118   :  { %v139_v20 = vmax.f32 %v135_v17, 0.0 }
 0x11a   :  { %v140_v21 = vpack.c.bf16 %v139_v20, %v138_v19 }
 0x11c   :  { %324 = vmatmul.mubr.bf16.vlgmr.msra.gmra.mrb[0].mxu1 %v140_v21 }
 0x1ef   :  { %v246_v23 = vpop.f32.mrb[0].mxu1 }
 0x1f0   :  { %v247_v24 = vadd.f32 %v278_v22, %v246_v23  ;;  %v325_v25 = vpop.f32.mrb[1].mxu1 }
 0x1f1   :  { %v249_v26 = vpop.f32.mrb[2].mxu1 }
 0x1f2   :  { %253 = vst [vmem:[#allocation8] sm:$0xff] %v247_v24  ;;  %v250_v27 = vadd.f32 %v278_v22, %v249_v26  ;;  %v326_v28 = vpop.f32.mrb[3].mxu1 }
 0x1f4   :  { %254 = vst [vmem:[#allocation8 + $0x8] sm:$0xff] %v250_v27 }
 0x1f5   :  { %425 = shalt.err (!%p422_p0)
}
 0x1f6   :  { %s426_s10 = scalar_lea.hbm %s557_s5, 256 }
 0x1f7   :  { %p427_p1 = scmp.ne.s32.totalorder %s557_s5, %s426_s10  ;;  %p430_p2 = scmp.lt.u32.totalorder %s426_s10, %s557_s5 }
 0x1f9   :  { %p432_p3 = pnand %p430_p2, %p427_p1 }
 0x1fb   :  { %435 = shalt.err (!%p432_p3)
}
 0x1fc   :  { %s450_s15 = smov 128   ;;  %s451_s16 = smov 8  }
 0x1fd   :  { %266 = dma.vmem_to_hbm [thread:$0]  %s261_s8, 256, %s557_s5, [#allocation4], %s450_s15, %s450_s15, %s451_s16  }
 0x1fe   :  { %440 = dma.done.wait [#allocation4], 256  }
 0x1ff   :  { %441 = vsyncadd [#allocation4], 4294967040 }
 0x200   :  { %270 = vsyncpa [#allocation3], 1 }
 0x201   :  { %271 = vsyncpa [#allocation6], 1 }
 0x202   :  { %272 = vsyncpa [#allocation4], 1 }

</bundles_post_ra>
